<compile_context>
chip_gen: v7x
topology: tpu7x:2x2x1
jax: 0.10.0
libtpu: 0.0.40
codegen_flags: <defaults>
</compile_context>

<pallas_src>
import functools

import jax
import jax.numpy as jnp
from jax.experimental import pallas as pl
from jax.experimental.pallas import tpu as pltpu


def _round_up(x, m):
    return (x + m - 1) // m * m


def _loss_kernel_single(p_ref, n_ref, out_ref, *, eps, reg, b_valid, tb):
    # Whole problem in one VMEM block: no accumulator, no init/finalize.
    pe = jnp.exp(p_ref[...])                                   # (tb, 1)
    sn = jnp.sum(jnp.exp(n_ref[...]), axis=1, keepdims=True)   # (tb, 1)
    prob = -jnp.log(pe / (pe + sn) + eps)                      # (tb, 1)
    if b_valid < tb:  # static: mask only emitted when the block overhangs B
        row = jax.lax.broadcasted_iota(jnp.int32, prob.shape, 0)
        prob = jnp.where(row < b_valid, prob, 0.0)
    out_ref[0] = jnp.sum(prob) + jnp.float32(reg)


def _loss_kernel_tiled(p_ref, n_ref, out_ref, acc_ref, *, eps, reg, b_valid,
                       tb, b_cover):
    i = pl.program_id(0)

    @pl.when(i == 0)
    def _():
        acc_ref[...] = jnp.zeros_like(acc_ref)

    pe = jnp.exp(p_ref[...])                                   # (tb, 1)
    sn = jnp.sum(jnp.exp(n_ref[...]), axis=1, keepdims=True)   # (tb, 1)
    prob = -jnp.log(pe / (pe + sn) + eps)                      # (tb, 1)
    if b_valid < b_cover:  # static: only when the last block overhangs B
        row = i * tb + jax.lax.broadcasted_iota(jnp.int32, prob.shape, 0)
        prob = jnp.where(row < b_valid, prob, 0.0)

    # Keep per-row partials in a VMEM vector accumulator; the cross-sublane
    # reduce + scalar move to SMEM happens exactly once, at the final step.
    acc_ref[...] += prob

    @pl.when(i == pl.num_programs(0) - 1)
    def _():
        out_ref[0] = jnp.sum(acc_ref[...]) + jnp.float32(reg)


def pallas_loss(p, n, *, reg=0.0, eps=1e-6, tb=None,
                n_tile_vmem_bytes=24 * 1024 * 1024,
                vmem_limit_bytes=48 * 1024 * 1024):
    """p: (B, 1) f32, n: (B, K) f32  ->  scalar f32 loss."""
    B, one = p.shape
    assert one == 1
    Bn, K = n.shape
    assert Bn == B

    p = p.astype(jnp.float32)
    n = n.astype(jnp.float32)

    # Physical lane footprint of one n row in VMEM (lanes round up to 128).
    K_lanes = max(128, _round_up(K, 128))

    # Batch tile: biggest that fits the double-buffered VMEM budget for the n
    # tile (2 * tb * K_lanes * 4B <= budget), capped at 1024 rows, multiple of
    # 8, and never larger than the (sublane-rounded) batch.
    if tb is None:
        tb = n_tile_vmem_bytes // (2 * K_lanes * 4)
        tb = min(1024, tb)
    tb = max(8, (int(tb) // 8) * 8)
    tb = min(tb, _round_up(B, 8))

    grid = pl.cdiv(B, tb)
    b_cover = grid * tb  # rows actually touched by the grid (>= B)

    # Make sure the scoped-VMEM limit covers at least the double-buffered n
    # tile plus a little headroom for p / accumulator / pipeline state.
    n_tile_bytes = 2 * tb * K_lanes * 4
    vmem_limit_bytes = int(max(vmem_limit_bytes, n_tile_bytes + (4 << 20)))
    # TODO(synk): tile K as a second (reduction) grid axis if a minimal
    # 8-row chunk ever exceeds the VMEM budget; NARM-sized K never does.

    compiler_params = pltpu.CompilerParams(
        dimension_semantics=("arbitrary",),
        vmem_limit_bytes=vmem_limit_bytes,
    )
    # TODO(synk): on v7x a leading size-2 "parallel" axis with per-core partial
    # outputs would use both TensorCores; kept single-core for portability.

    if grid == 1:
        kernel = functools.partial(
            _loss_kernel_single, eps=float(eps), reg=float(reg),
            b_valid=B, tb=tb)
        out = pl.pallas_call(
            kernel,
            out_shape=jax.ShapeDtypeStruct((1,), jnp.float32),
            grid_spec=pltpu.PrefetchScalarGridSpec(
                num_scalar_prefetch=0,
                grid=(1,),
                in_specs=[
                    pl.BlockSpec((tb, 1), lambda i: (0, 0)),
                    pl.BlockSpec((tb, K), lambda i: (0, 0)),
                ],
                out_specs=pl.BlockSpec(memory_space=pltpu.SMEM),
            ),
            compiler_params=compiler_params,
        )(p, n)
        return out[0]

    kernel = functools.partial(
        _loss_kernel_tiled, eps=float(eps), reg=float(reg),
        b_valid=B, tb=tb, b_cover=b_cover)
    out = pl.pallas_call(
        kernel,
        out_shape=jax.ShapeDtypeStruct((1,), jnp.float32),
        grid_spec=pltpu.PrefetchScalarGridSpec(
            num_scalar_prefetch=0,
            grid=(grid,),
            in_specs=[
                pl.BlockSpec((tb, 1), lambda i: (i, 0)),
                pl.BlockSpec((tb, K), lambda i: (i, 0)),
            ],
            out_specs=pl.BlockSpec(memory_space=pltpu.SMEM),
            scratch_shapes=[pltpu.VMEM((tb, 1), jnp.float32)],
        ),
        compiler_params=compiler_params,
    )(p, n)
    return out[0]


def reference_loss(p, n, *, reg=0.0, eps=1e-6):
    pe = jnp.exp(p)
    ne = jnp.exp(n)
    prob = -jnp.log(pe / (pe + jnp.sum(ne, axis=1, keepdims=True)) + eps)
    return jnp.sum(prob) + reg


if __name__ == "__main__":
    # Deterministic synthetic regularizer (stands in for gamma * num_params).
    gamma = 1e-5
    num_params_synthetic = 12_345
    reg = gamma * num_params_synthetic
    eps = 1e-6

    # Case 1: tiny demo config -> single-block fast path (grid=(1,)).
    key = jax.random.PRNGKey(0)
    kp, kn = jax.random.split(key)
    B, K = 16, 128
    p = jax.random.normal(kp, (B, 1), dtype=jnp.float32)
    n = jax.random.normal(kn, (B, K), dtype=jnp.float32)
    loss = jax.block_until_ready(pallas_loss(p, n, reg=reg, eps=eps))
    ref = jax.block_until_ready(reference_loss(p, n, reg=reg, eps=eps))
    assert jnp.allclose(loss, ref, rtol=1e-5, atol=1e-5), (loss, ref)

    # Case 2: ragged shapes -> exercises the full-K (non-128-multiple) block,
    # the ragged final batch block + in-kernel row mask, and the multi-step
    # tiled path with the VMEM vector accumulator.
    kp2, kn2 = jax.random.split(jax.random.PRNGKey(1))
    B2, K2 = 40, 130
    p2 = jax.random.normal(kp2, (B2, 1), dtype=jnp.float32)
    n2 = jax.random.normal(kn2, (B2, K2), dtype=jnp.float32)
    loss2 = jax.block_until_ready(pallas_loss(p2, n2, reg=reg, eps=eps, tb=16))
    ref2 = jax.block_until_ready(reference_loss(p2, n2, reg=reg, eps=eps))
    assert jnp.allclose(loss2, ref2, rtol=1e-5, atol=1e-5), (loss2, ref2)

    print("KERNEL_OK")
</pallas_src>

<mosaic_0001>
module attributes {stable_mosaic.version = 11 : i64} {
  func.func @_loss_kernel_single(%arg0: i32, %arg1: memref<16x1xf32, #tpu.memory_space<vmem>>, %arg2: memref<16x128xf32, #tpu.memory_space<vmem>>, %arg3: memref<1xf32, #tpu.memory_space<smem>>) attributes {dimension_semantics = [#tpu.dimension_semantics<arbitrary>], iteration_bounds = array<i64: 1>, scalar_prefetch = 0 : i64, scratch_operands = 0 : i64, tpu.core_type = #tpu.core_type<tc>, window_params = [{pipeline_mode = #tpu.pipeline_mode<synchronous>, transform_indices = @transform_0, window_bounds = array<i64: 16, 1>}, {pipeline_mode = #tpu.pipeline_mode<synchronous>, transform_indices = @transform_1, window_bounds = array<i64: 16, 128>}, {transform_indices = @transform_2, window_bounds = array<i64: 1>}]} {
    %c0 = arith.constant 0 : index
    %c0_0 = arith.constant 0 : index
    %0 = vector.load %arg1[%c0, %c0_0] : memref<16x1xf32, #tpu.memory_space<vmem>>, vector<16x1xf32>
    %1 = math.exp %0 : vector<16x1xf32>
    %c0_1 = arith.constant 0 : index
    %c0_2 = arith.constant 0 : index
    %2 = vector.load %arg2[%c0_1, %c0_2] : memref<16x128xf32, #tpu.memory_space<vmem>>, vector<16x128xf32>
    %3 = math.exp %2 : vector<16x128xf32>
    %cst = arith.constant dense<0.000000e+00> : vector<16xf32>
    %4 = vector.multi_reduction <add>, %3, %cst [1] : vector<16x128xf32> to vector<16xf32>
    %5 = vector.shape_cast %4 : vector<16xf32> to vector<16x1xf32>
    %6 = arith.addf %1, %5 : vector<16x1xf32>
    %7 = arith.divf %1, %6 : vector<16x1xf32>
    %cst_3 = arith.constant 9.99999997E-7 : f32
    %8 = vector.broadcast %cst_3 : f32 to vector<16x1xf32>
    %9 = arith.addf %7, %8 : vector<16x1xf32>
    %10 = math.log %9 : vector<16x1xf32>
    %cst_4 = arith.constant 0.000000e+00 : f32
    %11 = vector.broadcast %cst_4 : f32 to vector<16x1xf32>
    %12 = arith.subf %11, %10 : vector<16x1xf32>
    %13 = vector.shape_cast %12 : vector<16x1xf32> to vector<1x16x1xf32>
    %cst_5 = arith.constant dense<0.000000e+00> : vector<1xf32>
    %14 = vector.multi_reduction <add>, %13, %cst_5 [1, 2] : vector<1x16x1xf32> to vector<1xf32>
    %15 = vector.shape_cast %14 : vector<1xf32> to vector<1x1x1xf32>
    %16 = vector.extract %15[0, 0, 0] : f32 from vector<1x1x1xf32>
    %cst_6 = arith.constant 1.234500e-01 : f32
    %17 = arith.addf %16, %cst_6 : f32
    %c0_7 = arith.constant 0 : index
    %18 = memref.load %arg3[%c0_7] : memref<1xf32, #tpu.memory_space<smem>>
    memref.store %17, %arg3[%c0_7] : memref<1xf32, #tpu.memory_space<smem>>
    return
  }
  func.func @transform_0(%arg0: i32) -> (i32, i32) {
    %c0_i32 = arith.constant 0 : i32
    %c0_i32_0 = arith.constant 0 : i32
    %c0_i32_1 = arith.constant 0 : i32
    return %c0_i32, %c0_i32_0 : i32, i32
  }
  func.func @transform_1(%arg0: i32) -> (i32, i32) {
    %c0_i32 = arith.constant 0 : i32
    %c0_i32_0 = arith.constant 0 : i32
    %c0_i32_1 = arith.constant 0 : i32
    return %c0_i32, %c0_i32_0 : i32, i32
  }
  func.func @transform_2(%arg0: i32) -> i32 {
    %c0_i32 = arith.constant 0 : i32
    %c0_i32_0 = arith.constant 0 : i32
    return %c0_i32 : i32
  }
}

</mosaic_0001>

<bundles_post_ra>
// kernel: tpu_custom_call.1
= control target key start
LH: loop header
LB: loop body
LE: loop exit
PB: predicated region body
PF: predicated region fallthrough
CT: control target
= control target key end

     0   :  { %s142_s0 = inlined_call_operand.vmem [shape: f32[16,1], index: 0, kind: input, shape index: {}]   ;;  %s143_s1 = inlined_call_operand.vmem [shape: f32[16,128], index: 1, kind: input, shape index: {}]   ;;  %s144_s2 = inlined_call_operand.hbm [shape: f32[1], index: 2, kind: output, shape index: {}]  }
   0x1   :  { %v18_v0 = vld [vmem:[%s143_s1] sm:$0xff]  ;;  %v19_v1 = vld [vmem:[%s143_s1 + $0x8] sm:$0xff] }
   0x2   :  { %7 = vsyncpa [#allocation3], 0  ;;  %v20_v2 = vmul.f32 1.442695, %v18_v0  ;;  %v22_v3 = vmul.f32 1.442695, %v19_v1 }
   0x3   :  { %v12_v6 = vld [vmem:[%s142_s0] sm:$0xff]  ;;  %v13_v8 = vld [vmem:[%s142_s0 + $0x8] sm:$0xff]  ;;  %vm42_vm0 = vcmask 7168   ;;  %s90_s19 = scalar_lea.hbm %s144_s2, 16 }
   0x4   :  { %74 = vpow2.f32 %v20_v2  ;;  %v14_v7 = vmul.f32 1.442695, %v12_v6  ;;  %v16_v9 = vmul.f32 1.442695, %v13_v8  ;;  %p91_p0 = scmp.ne.s32.totalorder %s144_s2, %s90_s19  ;;  %p94_p1 = scmp.lt.u32.totalorder %s90_s19, %s144_s2 }
   0x5   :  { %76 = vpow2.f32 %v22_v3 }
   0x6   :  { %78 = vpow2.f32 %v14_v7  ;;  %p96_p2 = pnand %p94_p1, %p91_p0 }
   0x7   :  { %80 = vpow2.f32 %v16_v9 }
   0xe   :  { %v75_v4 = vpop.eup %74 }
   0xf   :  { %24 = vadd.xlane.f32.xlu0 %v75_v4  ;;  %v77_v5 = vpop.eup %76 }
  0x10   :  { %v79_v10 = vpop.eup %78 }
  0x11   :  { %v81_v13 = vpop.eup %80 }
  0x13   :  { %26 = vadd.xlane.f32.xlu0 %v77_v5 }
  0x9c   :  { %v25_v11 = vpop.xlane.xlu0 %24 }
  0x9d   :  { %v28_v12 = vadd.f32 %v79_v10, %v25_v11 }
  0x9f   :  { %82 = vrcp.f32 %v28_v12 }
  0xa0   :  { %v27_v14 = vpop.xlane.xlu0 %26 }
  0xa1   :  { %v29_v15 = vadd.f32 %v81_v13, %v27_v14 }
  0xa3   :  { %84 = vrcp.f32 %v29_v15 }
  0xa9   :  { %v83_v16 = vpop.eup %82 }
  0xaa   :  { %v31_v17 = vmul.f32 %v83_v16, %v79_v10 }
  0xac   :  { %v34_v18 = vadd.f32 1e-06, %v31_v17 }
  0xad   :  { %v85_v19 = vpop.eup %84 }
  0xae   :  { %v33_v20 = vmul.f32 %v85_v19, %v81_v13  ;;  %86 = vlog2.f32 %v34_v18 }
  0xb0   :  { %v35_v21 = vadd.f32 1e-06, %v33_v20 }
  0xb2   :  { %88 = vlog2.f32 %v35_v21 }
  0xb8   :  { %v87_v22 = vpop.eup %86 }
  0xb9   :  { %v37_v23 = vmul.f32 0.6931472, %v87_v22 }
  0xbb   :  { %v40_v26 = vsub.f32 0.0, %v37_v23 }
  0xbc   :  { %v89_v24 = vpop.eup %88 }
  0xbd   :  { %v39_v25 = vmul.f32 0.6931472, %v89_v24  ;;  %v43_v28 = vsel %vm42_vm0, %v40_v26, 0.0 }
  0xbf   :  { %v41_v27 = vsub.f32 0.0, %v39_v25 }
  0xc1   :  { %v44_v29 = vsel %vm42_vm0, %v41_v27, 0.0 }
  0xc2   :  { %v45_v30 = vadd.f32 %v44_v29, %v43_v28 }
  0xc4   :  { %46 = vadd.xlane.f32.xlu1 %v45_v30 }
 0x151   :  { %v47_v31 = vpop.xlane.xlu1 %46 }
 0x152   :  { %v48_v32 = vrot.slane %v47_v31, 4 }
 0x154   :  { %v49_v33 = vadd.f32 %v48_v32, %v47_v31 }
 0x156   :  { %v50_v34 = vrot.slane %v49_v33, 2 }
 0x158   :  { %v51_v35 = vadd.f32 %v50_v34, %v49_v33 }
 0x15a   :  { %v52_v36 = vrot.slane %v51_v35, 1 }
 0x15c   :  { %v53_v37 = vadd.f32 %v52_v36, %v51_v35 }
 0x15e   :  { %71 = vpush %v53_v37 }
 0x18f   :  { %s72_s0 = spop %71 }
 0x190   :  { %s55_s1 = sadd.f32 0.12345, %s72_s0 }
 0x192   :  { %57 = sst [smem:[#allocation2]] %s55_s1 }
 0x193   :  { %99 = shalt.err (!%p96_p2)
}
 0x194   :  { %s102_s24 = smov [#allocation2]  }
 0x195   :  { %65 = dma.smem_to_hbm %s102_s24, 16, %s144_s2, [#allocation3]  }
 0x196   :  { %100 = dma.done.wait [#allocation3], 16  }
 0x197   :  { %101 = vsyncadd [#allocation3], 4294967280 }
 0x198   :  { %69 = sfence }
 0x199   :  { %70 = vsyncpa [#allocation3], 1 }

</bundles_post_ra>
